<compile_context>
chip_gen: v7x
topology: tpu7x:2x2x1
jax: 0.10.0
libtpu: 0.0.40
codegen_flags: <defaults>
</compile_context>

<pallas_src>
import functools
import math

import jax
import jax.numpy as jnp
from jax import lax
from jax.experimental import pallas as pl
from jax.experimental.pallas import tpu as pltpu

_BN_EPS = 1e-5
_SLACK = 8          # extra rows on the flat padded scratches (tap slabs may run
                    # a couple of rows past the end; those rows only feed masked
                    # / discarded positions and are zero-initialized).


# ---------------------------------------------------------------------------
# Shared in-kernel helper: row-tiled 3x3 conv from flat padded VMEM scratches
# ---------------------------------------------------------------------------
def _conv_tiles(srcs, scale, shift, ho, wo, th, slope, out_ref=None, dst_flat=None):
    """3x3 conv (pad=1) + per-channel scale/shift (+ optional LeakyReLU).

    srcs:     list of (flat_src_ref, w_taps_ref); flat_src_ref holds the zero-
              padded input in row-major flattened form ((ho+2)*(wo+2)+slack, Cin),
              w_taps_ref is (9, Cin, Cout) with tap k = ky*3 + kx.
    dst_flat: flat padded destination scratch (result written into its interior,
              padding columns forced to zero) -- used when the result feeds the
              next conv.
    out_ref:  (1, ho, wo, Cout) output ref -- used for the final conv of a call.
    """
    row_w = wo + 2
    n = th * row_w
    n_tiles = ho // th

    col_mask = None
    if dst_flat is not None:
        q = lax.broadcasted_iota(jnp.int32, (n, 1), 0)
        col_mask = ((q % row_w) < wo).astype(jnp.float32)

    for it in range(n_tiles):
        h0 = it * th
        acc = None
        for k in range(9):
            ky, kx = k // 3, k % 3
            start = (h0 + ky) * row_w + kx
            for (src_ref, w_ref) in srcs:
                slab = src_ref[pl.ds(start, n), :]                   # (n, Cin)
                d = jnp.dot(slab, w_ref[k], preferred_element_type=jnp.float32)
                acc = d if acc is None else acc + d
        y = acc * scale + shift
        if slope is not None:
            y = jnp.maximum(y, slope * y)                            # LeakyReLU
        if dst_flat is not None:
            # Single contiguous store; wrapped-column garbage is masked to zero
            # and lands exactly in the padding columns of the destination.
            dst_flat[pl.ds((h0 + 1) * row_w + 1, n), :] = (
                y * col_mask).astype(dst_flat.dtype)
        else:
            for h in range(th):
                out_ref[0, h0 + h] = y[h * row_w:h * row_w + wo, :].astype(
                    out_ref.dtype)


# ---------------------------------------------------------------------------
# Pallas kernels
# ---------------------------------------------------------------------------
def _matmul_bias_kernel(x_ref, w_ref, b_ref, o_ref):
    """o = x @ w + b   (tokens x Cin) @ (Cin x Cout) -- used for the 1x1 conv."""
    o_ref[...] = (
        jnp.dot(x_ref[...], w_ref[...], preferred_element_type=jnp.float32)
        + b_ref[...]
    ).astype(o_ref.dtype)


def _h_interp_kernel(rh_ref, x_ref, o_ref):
    """Separable bilinear, H pass: o[b] = R_h @ x[b] with x flattened to (Hi, Wi*C)."""
    o_ref[0] = jnp.dot(
        rh_ref[...], x_ref[0], preferred_element_type=jnp.float32
    ).astype(o_ref.dtype)


def _stage_kernel(rw_ref, t_ref, skip_ref, w1a_ref, w1b_ref, s1_ref, b1_ref,
                  w2_ref, s2_ref, b2_ref, o_ref,
                  up_flat, skip_flat, y1_flat, *, ho, wo, wi, th, slope):
    """One full UpSampleBN stage for one batch element.

    t_ref:    (1, ho, wi, Cup)  H-interpolated input (W pass done here)
    skip_ref: (1, ho, wo, Cs)   skip connection
    w1a/w1b:  conv1 taps pre-split along Cin = Cup + Cs (fused concat)
    scratches are flat padded buffers ((ho+2)*(wo+2)+slack, C), re-zeroed every
    grid step so borders are valid and megacore grid splitting stays safe.
    """
    row_w = wo + 2

    up_flat[...] = jnp.zeros(up_flat.shape, up_flat.dtype)
    skip_flat[...] = jnp.zeros(skip_flat.shape, skip_flat.dtype)
    y1_flat[...] = jnp.zeros(y1_flat.shape, y1_flat.dtype)

    rw = rw_ref[...]                                                 # (wo, wi)
    # W pass of the bilinear upsample + skip copy, written straight into the
    # padded interiors (no concat / pad arrays ever hit HBM).
    for r in range(ho):
        off = (r + 1) * row_w + 1
        up_flat[pl.ds(off, wo), :] = jnp.dot(
            rw, t_ref[0, r], preferred_element_type=jnp.float32
        ).astype(up_flat.dtype)
        skip_flat[pl.ds(off, wo), :] = skip_ref[0, r]

    # conv1 (+BN+LeakyReLU): two accumulating dots per tap (up | skip).
    _conv_tiles([(up_flat, w1a_ref), (skip_flat, w1b_ref)],
                s1_ref[...], b1_ref[...], ho, wo, th, slope,
                dst_flat=y1_flat)
    # conv2 (+BN+LeakyReLU): intermediate never leaves VMEM.
    _conv_tiles([(y1_flat, w2_ref)],
                s2_ref[...], b2_ref[...], ho, wo, th, slope,
                out_ref=o_ref)


def _final_conv_kernel(x_ref, w_ref, s_ref, b_ref, o_ref, x_flat, *, h, w, th):
    """Plain 3x3 conv, padding=1, bias only (no BN / activation)."""
    row_w = w + 2
    x_flat[...] = jnp.zeros(x_flat.shape, x_flat.dtype)
    for r in range(h):
        x_flat[pl.ds((r + 1) * row_w + 1, w), :] = x_ref[0, r]
    _conv_tiles([(x_flat, w_ref)], s_ref[...], b_ref[...], h, w, th, None,
                out_ref=o_ref)


# ---------------------------------------------------------------------------
# Wrappers around pallas_call
# ---------------------------------------------------------------------------
def _pick_row_tile(h, row_w, target=256):
    """Smallest divisor of h whose tile reaches ~target MXU rows (else whole h)."""
    for d in range(1, h + 1):
        if h % d == 0 and d * row_w >= target:
            return d
    return h


def _conv1x1(x_tokens, w, b):
    n, cin = x_tokens.shape
    cout = w.shape[1]
    return pl.pallas_call(
        _matmul_bias_kernel,
        out_shape=jax.ShapeDtypeStruct((n, cout), x_tokens.dtype),
        grid_spec=pltpu.PrefetchScalarGridSpec(
            num_scalar_prefetch=0,
            grid=(1,),
            in_specs=[
                pl.BlockSpec((n, cin), lambda i: (0, 0)),
                pl.BlockSpec((cin, cout), lambda i: (0, 0)),
                pl.BlockSpec((1, cout), lambda i: (0, 0)),
            ],
            out_specs=pl.BlockSpec((n, cout), lambda i: (0, 0)),
        ),
        compiler_params=pltpu.CompilerParams(dimension_semantics=("arbitrary",)),
    )(x_tokens, w, b)


def _interp_matrix(n_out, n_in):
    """Row-stochastic 1-D linear interpolation matrix, align_corners=True."""
    if n_in == 1:
        return jnp.ones((n_out, 1), jnp.float32)
    i = jnp.arange(n_out, dtype=jnp.float32)
    src = i * (n_in - 1) / (n_out - 1) if n_out > 1 else jnp.zeros((1,), jnp.float32)
    i0 = jnp.clip(jnp.floor(src).astype(jnp.int32), 0, n_in - 1)
    i1 = jnp.clip(i0 + 1, 0, n_in - 1)
    w1 = src - i0.astype(jnp.float32)
    w0 = 1.0 - w1
    rows = jnp.arange(n_out)
    m = jnp.zeros((n_out, n_in), jnp.float32)
    return m.at[rows, i0].add(w0).at[rows, i1].add(w1)


def _h_interp(x, rh):
    """x: (B, Hi, Wi, C) -> (B, Ho, Wi, C); one 2-D matmul per batch element."""
    B, Hi, Wi, C = x.shape
    Ho = rh.shape[0]
    x2 = x.reshape(B, Hi, Wi * C)
    t = pl.pallas_call(
        _h_interp_kernel,
        out_shape=jax.ShapeDtypeStruct((B, Ho, Wi * C), x.dtype),
        grid_spec=pltpu.PrefetchScalarGridSpec(
            num_scalar_prefetch=0,
            grid=(B,),
            in_specs=[
                pl.BlockSpec((Ho, Hi), lambda b: (0, 0)),
                pl.BlockSpec((1, Hi, Wi * C), lambda b: (b, 0, 0)),
            ],
            out_specs=pl.BlockSpec((1, Ho, Wi * C), lambda b: (b, 0, 0)),
        ),
        compiler_params=pltpu.CompilerParams(dimension_semantics=("parallel",)),
    )(rh, x2)
    return t.reshape(B, Ho, Wi, C)


def _fold_conv_bn(w, b, gamma, beta, mean, var):
    cout, cin = w.shape[0], w.shape[1]
    w_taps = jnp.transpose(w, (2, 3, 1, 0)).reshape(9, cin, cout)
    inv = gamma / jnp.sqrt(var + _BN_EPS)
    scale = inv.reshape(1, cout)
    shift = (b * inv + beta - mean * inv).reshape(1, cout)
    return w_taps, scale, shift


def _upsample_bn_stage(x, skip, sp):
    """UpSampleBN: bilinear upsample to skip size, concat, (conv+BN+LReLU) x 2."""
    B, Hi, Wi, Cup = x.shape
    _, Ho, Wo, Cs = skip.shape

    rh = _interp_matrix(Ho, Hi)
    rw = _interp_matrix(Wo, Wi)
    t = _h_interp(x, rh)                                 # separable H pass

    w1, sc1, sh1 = _fold_conv_bn(sp['w1'], sp['b1'], sp['g1'], sp['be1'],
                                 sp['m1'], sp['v1'])
    w1a, w1b = w1[:, :Cup, :], w1[:, Cup:, :]            # fused concat: split Cin
    w2, sc2, sh2 = _fold_conv_bn(sp['w2'], sp['b2'], sp['g2'], sp['be2'],
                                 sp['m2'], sp['v2'])
    Cout = w2.shape[2]

    row_w = Wo + 2
    TH = _pick_row_tile(Ho, row_w)
    pad_n = (Ho + 2) * row_w + _SLACK

    kern = functools.partial(_stage_kernel, ho=Ho, wo=Wo, wi=Wi, th=TH, slope=0.01)
    return pl.pallas_call(
        kern,
        out_shape=jax.ShapeDtypeStruct((B, Ho, Wo, Cout), x.dtype),
        grid_spec=pltpu.PrefetchScalarGridSpec(
            num_scalar_prefetch=0,
            grid=(B,),
            in_specs=[
                pl.BlockSpec((Wo, Wi), lambda b: (0, 0)),
                pl.BlockSpec((1, Ho, Wi, Cup), lambda b: (b, 0, 0, 0)),
                pl.BlockSpec((1, Ho, Wo, Cs), lambda b: (b, 0, 0, 0)),
                pl.BlockSpec((9, Cup, Cout), lambda b: (0, 0, 0)),
                pl.BlockSpec((9, Cs, Cout), lambda b: (0, 0, 0)),
                pl.BlockSpec((1, Cout), lambda b: (0, 0)),
                pl.BlockSpec((1, Cout), lambda b: (0, 0)),
                pl.BlockSpec((9, Cout, Cout), lambda b: (0, 0, 0)),
                pl.BlockSpec((1, Cout), lambda b: (0, 0)),
                pl.BlockSpec((1, Cout), lambda b: (0, 0)),
            ],
            out_specs=pl.BlockSpec((1, Ho, Wo, Cout), lambda b: (b, 0, 0, 0)),
            scratch_shapes=[
                pltpu.VMEM((pad_n, Cup), jnp.float32),
                pltpu.VMEM((pad_n, Cs), jnp.float32),
                pltpu.VMEM((pad_n, Cout), jnp.float32),
            ],
        ),
        compiler_params=pltpu.CompilerParams(
            dimension_semantics=("parallel",),
            vmem_limit_bytes=48 * 1024 * 1024,
        ),
    )(rw, t, skip, w1a, w1b, sc1, sh1, w2, sc2, sh2)


def _final_conv3x3(x, w, b):
    """Last 3x3 conv (padding=1, bias, no BN / activation)."""
    B, H, W, Cin = x.shape
    cout = w.shape[0]
    w_taps = jnp.transpose(w, (2, 3, 1, 0)).reshape(9, Cin, cout)
    scale = jnp.ones((1, cout), jnp.float32)
    shift = b.reshape(1, cout)
    row_w = W + 2
    TH = _pick_row_tile(H, row_w)
    pad_n = (H + 2) * row_w + _SLACK

    kern = functools.partial(_final_conv_kernel, h=H, w=W, th=TH)
    return pl.pallas_call(
        kern,
        out_shape=jax.ShapeDtypeStruct((B, H, W, cout), x.dtype),
        grid_spec=pltpu.PrefetchScalarGridSpec(
            num_scalar_prefetch=0,
            grid=(B,),
            in_specs=[
                pl.BlockSpec((1, H, W, Cin), lambda b_: (b_, 0, 0, 0)),
                pl.BlockSpec((9, Cin, cout), lambda b_: (0, 0, 0)),
                pl.BlockSpec((1, cout), lambda b_: (0, 0)),
                pl.BlockSpec((1, cout), lambda b_: (0, 0)),
            ],
            out_specs=pl.BlockSpec((1, H, W, cout), lambda b_: (b_, 0, 0, 0)),
            scratch_shapes=[pltpu.VMEM((pad_n, Cin), jnp.float32)],
        ),
        compiler_params=pltpu.CompilerParams(
            dimension_semantics=("parallel",),
            vmem_limit_bytes=48 * 1024 * 1024,
        ),
    )(x, w_taps, scale, shift)


# ---------------------------------------------------------------------------
# DecoderBN forward (Pallas path)
# ---------------------------------------------------------------------------
def decoder_bn_forward(features, p):
    """`features` indexed exactly like the PyTorch module (NCHW tensors at
    indices 4, 5, 6, 8, 11). Returns the NCHW output of conv3."""
    x_block0, x_block1, x_block2, x_block3, x_block4 = (
        features[4], features[5], features[6], features[8], features[11])

    nhwc = lambda t: jnp.transpose(t, (0, 2, 3, 1))
    s0, s1, s2, s3, s4 = map(nhwc, (x_block0, x_block1, x_block2, x_block3, x_block4))

    # conv2: 1x1 conv with padding=1 -> zero-pad spatially, then a token matmul
    # (the padded ring comes out as exactly the bias, matching PyTorch).
    B, h4, w4, cb = s4.shape
    F = p['conv2_w'].shape[0]
    x4p = jnp.pad(s4, ((0, 0), (1, 1), (1, 1), (0, 0)))
    hp, wp = h4 + 2, w4 + 2
    wc = p['conv2_w'].reshape(F, cb).T
    bc = p['conv2_b'].reshape(1, F)
    x = _conv1x1(x4p.reshape(B * hp * wp, cb), wc, bc).reshape(B, hp, wp, F)

    x = _upsample_bn_stage(x, s3, p['up1'])
    x = _upsample_bn_stage(x, s2, p['up2'])
    x = _upsample_bn_stage(x, s1, p['up3'])
    x = _upsample_bn_stage(x, s0, p['up4'])

    out = _final_conv3x3(x, p['conv3_w'], p['conv3_b'])
    return jnp.transpose(out, (0, 3, 1, 2))             # back to NCHW, like PyTorch


# ---------------------------------------------------------------------------
# Plain-JAX reference (mirrors the PyTorch forward)
# ---------------------------------------------------------------------------
def _ref_conv(x, w, b, padding):
    w_hwio = jnp.transpose(w, (2, 3, 1, 0))
    y = lax.conv_general_dilated(
        x, w_hwio, window_strides=(1, 1),
        padding=((padding, padding), (padding, padding)),
        dimension_numbers=("NHWC", "HWIO", "NHWC"))
    return y + b.reshape(1, 1, 1, -1)


def _ref_bn(x, gamma, beta, mean, var):
    inv = gamma / jnp.sqrt(var + _BN_EPS)
    return x * inv.reshape(1, 1, 1, -1) + (beta - mean * inv).reshape(1, 1, 1, -1)


def _ref_lrelu(x):
    return jnp.where(x >= 0, x, 0.01 * x)


def _ref_upsample(x, h_out, w_out):
    rh = _interp_matrix(h_out, x.shape[1])
    rw = _interp_matrix(w_out, x.shape[2])
    t = jnp.einsum("oh,bhwc->bowc", rh, x)
    return jnp.einsum("pw,bowc->bopc", rw, t)


def _ref_decoder(features, p):
    x_block0, x_block1, x_block2, x_block3, x_block4 = (
        features[4], features[5], features[6], features[8], features[11])
    nhwc = lambda t: jnp.transpose(t, (0, 2, 3, 1))
    s0, s1, s2, s3, s4 = map(nhwc, (x_block0, x_block1, x_block2, x_block3, x_block4))

    x = _ref_conv(s4, p['conv2_w'], p['conv2_b'], padding=1)

    def stage(x, skip, sp):
        up = _ref_upsample(x, skip.shape[1], skip.shape[2])
        f = jnp.concatenate([up, skip], axis=-1)
        y = _ref_lrelu(_ref_bn(_ref_conv(f, sp['w1'], sp['b1'], 1),
                               sp['g1'], sp['be1'], sp['m1'], sp['v1']))
        y = _ref_lrelu(_ref_bn(_ref_conv(y, sp['w2'], sp['b2'], 1),
                               sp['g2'], sp['be2'], sp['m2'], sp['v2']))
        return y

    x = stage(x, s3, p['up1'])
    x = stage(x, s2, p['up2'])
    x = stage(x, s1, p['up3'])
    x = stage(x, s0, p['up4'])
    out = _ref_conv(x, p['conv3_w'], p['conv3_b'], 1)
    return jnp.transpose(out, (0, 3, 1, 2))


# ---------------------------------------------------------------------------
# Parameter construction (torch-layout weights, scaled-down num_features)
# ---------------------------------------------------------------------------
def _init_params(key, num_features=32, bottleneck_features=32, num_classes=1):
    F = num_features
    keys = iter(jax.random.split(key, 64))
    nk = lambda: next(keys)

    def conv(cout, cin, k):
        w = jax.random.normal(nk(), (cout, cin, k, k), jnp.float32) / math.sqrt(cin * k * k)
        b = 0.1 * jax.random.normal(nk(), (cout,), jnp.float32)
        return w, b

    def bn(c):
        return dict(
            g=1.0 + 0.1 * jax.random.normal(nk(), (c,), jnp.float32),
            be=0.1 * jax.random.normal(nk(), (c,), jnp.float32),
            m=0.1 * jax.random.normal(nk(), (c,), jnp.float32),
            v=jax.random.uniform(nk(), (c,), jnp.float32, minval=0.5, maxval=1.5),
        )

    def up(cin, cout):
        w1, b1 = conv(cout, cin, 3)
        bn1 = bn(cout)
        w2, b2 = conv(cout, cout, 3)
        bn2 = bn(cout)
        return dict(w1=w1, b1=b1, g1=bn1['g'], be1=bn1['be'], m1=bn1['m'], v1=bn1['v'],
                    w2=w2, b2=b2, g2=bn2['g'], be2=bn2['be'], m2=bn2['m'], v2=bn2['v'])

    conv2_w, conv2_b = conv(F, bottleneck_features, 1)
    conv3_w, conv3_b = conv(num_classes, F // 16, 3)
    return dict(
        conv2_w=conv2_w, conv2_b=conv2_b,
        up1=up(F // 1 + 112 + 64, F // 2),
        up2=up(F // 2 + 40 + 24, F // 4),
        up3=up(F // 4 + 24 + 16, F // 8),
        up4=up(F // 8 + 16 + 8, F // 16),
        conv3_w=conv3_w, conv3_b=conv3_b,
    )


if __name__ == "__main__":
    B = 2
    NUM_FEATURES = 32          # scaled-down stand-in for the default 2048
    BOTTLENECK = 32
    NUM_CLASSES = 1

    key = jax.random.PRNGKey(0)
    k_par, kf0, kf1, kf2, kf3, kf4 = jax.random.split(key, 6)

    # Encoder skip maps (NCHW). Channel counts 24/40/64/176 are fixed by the
    # hard-coded skip_input arithmetic in DecoderBN.__init__.
    x_block0 = jax.random.normal(kf0, (B, 24, 48, 48), jnp.float32)        # features[4]
    x_block1 = jax.random.normal(kf1, (B, 40, 24, 24), jnp.float32)        # features[5]
    x_block2 = jax.random.normal(kf2, (B, 64, 12, 12), jnp.float32)        # features[6]
    x_block3 = jax.random.normal(kf3, (B, 176, 6, 6), jnp.float32)         # features[8]
    x_block4 = jax.random.normal(kf4, (B, BOTTLENECK, 2, 2), jnp.float32)  # features[11]

    features = [None] * 12
    features[4], features[5], features[6] = x_block0, x_block1, x_block2
    features[8], features[11] = x_block3, x_block4

    params = _init_params(k_par, NUM_FEATURES, BOTTLENECK, NUM_CLASSES)

    out = decoder_bn_forward(features, params)
    out = jax.block_until_ready(out)

    ref = _ref_decoder(features, params)
    assert out.shape == (B, NUM_CLASSES, 48, 48), out.shape
    max_err = float(jnp.max(jnp.abs(out - ref)))
    assert jnp.allclose(out, ref, atol=2e-3, rtol=2e-3), f"max abs err = {max_err}"
    print("KERNEL_OK")
</pallas_src>

<mosaic_0001>
module attributes {stable_mosaic.version = 11 : i64} {
  func.func @_matmul_bias_kernel(%arg0: i32, %arg1: memref<32x32xf32, #tpu.memory_space<vmem>>, %arg2: memref<32x32xf32, #tpu.memory_space<vmem>>, %arg3: memref<1x32xf32, #tpu.memory_space<vmem>>, %arg4: memref<32x32xf32, #tpu.memory_space<vmem>>) attributes {dimension_semantics = [#tpu.dimension_semantics<arbitrary>], iteration_bounds = array<i64: 1>, scalar_prefetch = 0 : i64, scratch_operands = 0 : i64, tpu.core_type = #tpu.core_type<tc>, window_params = [{pipeline_mode = #tpu.pipeline_mode<synchronous>, transform_indices = @transform_0, window_bounds = array<i64: 32, 32>}, {pipeline_mode = #tpu.pipeline_mode<synchronous>, transform_indices = @transform_1, window_bounds = array<i64: 32, 32>}, {pipeline_mode = #tpu.pipeline_mode<synchronous>, transform_indices = @transform_2, window_bounds = array<i64: 1, 32>}, {pipeline_mode = #tpu.pipeline_mode<synchronous>, transform_indices = @transform_3, window_bounds = array<i64: 32, 32>}]} {
    %c0 = arith.constant 0 : index
    %c0_0 = arith.constant 0 : index
    %0 = vector.load %arg1[%c0, %c0_0] : memref<32x32xf32, #tpu.memory_space<vmem>>, vector<32x32xf32>
    %c0_1 = arith.constant 0 : index
    %c0_2 = arith.constant 0 : index
    %1 = vector.load %arg2[%c0_1, %c0_2] : memref<32x32xf32, #tpu.memory_space<vmem>>, vector<32x32xf32>
    %cst = arith.constant dense<0.000000e+00> : vector<32x32xf32>
    %2 = tpu.matmul %0, %1, %cst {dimension_numbers = #tpu.dot_dimension_numbers<[1], [0], [0], [1], [0, 0, 1, 1], [], []>} : vector<32x32xf32>, vector<32x32xf32>, vector<32x32xf32> -> vector<32x32xf32>
    %c0_3 = arith.constant 0 : index
    %c0_4 = arith.constant 0 : index
    %3 = vector.load %arg3[%c0_3, %c0_4] : memref<1x32xf32, #tpu.memory_space<vmem>>, vector<1x32xf32>
    %4 = vector.broadcast %3 : vector<1x32xf32> to vector<32x32xf32>
    %5 = arith.addf %2, %4 : vector<32x32xf32>
    %c0_5 = arith.constant 0 : index
    %c0_6 = arith.constant 0 : index
    %6 = vector.load %arg4[%c0_5, %c0_6] : memref<32x32xf32, #tpu.memory_space<vmem>>, vector<32x32xf32>
    tpu.vector_store %arg4[%c0_5, %c0_6], %5 {strides = array<i32>} : memref<32x32xf32, #tpu.memory_space<vmem>>, vector<32x32xf32>,
    return
  }
  func.func @transform_0(%arg0: i32) -> (i32, i32) {
    %c0_i32 = arith.constant 0 : i32
    %c0_i32_0 = arith.constant 0 : i32
    %c0_i32_1 = arith.constant 0 : i32
    return %c0_i32, %c0_i32_0 : i32, i32
  }
  func.func @transform_1(%arg0: i32) -> (i32, i32) {
    %c0_i32 = arith.constant 0 : i32
    %c0_i32_0 = arith.constant 0 : i32
    %c0_i32_1 = arith.constant 0 : i32
    return %c0_i32, %c0_i32_0 : i32, i32
  }
  func.func @transform_2(%arg0: i32) -> (i32, i32) {
    %c0_i32 = arith.constant 0 : i32
    %c0_i32_0 = arith.constant 0 : i32
    %c0_i32_1 = arith.constant 0 : i32
    return %c0_i32, %c0_i32_0 : i32, i32
  }
  func.func @transform_3(%arg0: i32) -> (i32, i32) {
    %c0_i32 = arith.constant 0 : i32
    %c0_i32_0 = arith.constant 0 : i32
    %c0_i32_1 = arith.constant 0 : i32
    return %c0_i32, %c0_i32_0 : i32, i32
  }
}

</mosaic_0001>

<bundles_post_ra>
// kernel: tpu_custom_call.1
= control target key start
LH: loop header
LB: loop body
LE: loop exit
PB: predicated region body
PF: predicated region fallthrough
CT: control target
= control target key end

     0   :  { %8 = vsyncpa [#allocation3], 0  ;;  %s375_s0 = inlined_call_operand.hbm [shape: f32[32,32], index: 0, kind: input, shape index: {}]   ;;  %s376_s1 = inlined_call_operand.hbm [shape: f32[32,32], index: 1, kind: input, shape index: {}]   ;;  %s377_s2 = inlined_call_operand.vmem [shape: f32[1,32], index: 2, kind: input, shape index: {}]   ;;  %s378_s3 = inlined_call_operand.hbm [shape: f32[32,32], index: 3, kind: output, shape index: {}]  }
   0x1   :  { %9 = vsyncpa [#allocation6], 0 }
   0x2   :  { %10 = vsyncpa [#allocation4], 0  ;;  %s294_s12 = smov [#allocation2]   ;;  %s222_s16 = scalar_lea.hbm %s375_s0, 512 }
   0x3   :  { %s16_s13 = sshll.u32 %s294_s12, 4  ;;  %p223_p0 = scmp.ne.s32.totalorder %s375_s0, %s222_s16  ;;  %s17_s13 = int_to_ptr.vmem [resolvable:$true] %s16_s13 }
   0x4   :  { %p226_p1 = scmp.lt.u32.totalorder %s222_s16, %s375_s0 }
   0x6   :  { %p228_p2 = pnand %p226_p1, %p223_p0 }
   0x8   :  { %231 = shalt.err (!%p228_p2)
}
   0x9   :  { %s232_s21 = scalar_lea.vmem %s17_s13, 512  ;;  %p237_p4 = scmp.lt.s32.totalorder %s17_s13, %s17_s13 }
   0xa   :  { %p233_p3 = scmp.ne.s32.totalorder %s17_s13, %s232_s21  ;;  %p238_p5 = scmp.lt.s32.totalorder %s232_s21, %s232_s21 }
   0xc   :  { %p239_p6 = por %p238_p5, %p237_p4 }
   0xe   :  { %p240_p7 = pnand %p239_p6, %p233_p3 }
  0x10   :  { %243 = shalt.err (!%p240_p7)
}
  0x11   :  { %s295_s22 = smov 128   ;;  %s296_s23 = smov 8  }
  0x12   :  { %22 = dma.hbm_to_vmem [thread:$0]  %s375_s0, 512, %s17_s13, [#allocation3], %s295_s22, %s295_s22, %s296_s23  }
  0x13   :  { %s297_s26 = smov [#allocation5]   ;;  %s244_s30 = scalar_lea.hbm %s376_s1, 512 }
  0x14   :  { %s28_s27 = sshll.u32 %s297_s26, 4  ;;  %p245_p8 = scmp.ne.s32.totalorder %s376_s1, %s244_s30  ;;  %s29_s27 = int_to_ptr.vmem [resolvable:$true] %s28_s27 }
  0x15   :  { %p248_p9 = scmp.lt.u32.totalorder %s244_s30, %s376_s1 }
  0x17   :  { %p250_p10 = pnand %p248_p9, %p245_p8 }
  0x19   :  { %253 = shalt.err (!%p250_p10)
}
  0x1a   :  { %s254_s8 = scalar_lea.vmem %s29_s27, 512  ;;  %p259_p12 = scmp.lt.s32.totalorder %s29_s27, %s29_s27 }
  0x1b   :  { %p255_p11 = scmp.ne.s32.totalorder %s29_s27, %s254_s8  ;;  %p260_p13 = scmp.lt.s32.totalorder %s254_s8, %s254_s8 }
  0x1d   :  { %p261_p0 = por %p260_p13, %p259_p12 }
  0x1f   :  { %p262_p1 = pnand %p261_p0, %p255_p11 }
  0x21   :  { %265 = shalt.err (!%p262_p1)
}
  0x22   :  { %34 = dma.hbm_to_vmem [thread:$0]  %s376_s1, 512, %s29_s27, [#allocation6], %s295_s22, %s295_s22, %s296_s23  }
  0x23   :  { %288 = dma.done.wait [#allocation3], 512  }
  0x24   :  { %289 = vsyncadd [#allocation3], 4294966784 }
  0x25   :  { %290 = dma.done.wait [#allocation6], 512  }
  0x26   :  { %291 = vsyncadd [#allocation6], 4294966784  ;;  %vm58_vm0 = vcmask 261120   ;;  %v47_v0 = vld [vmem:[#allocation5] sm:$0xff]  ;;  %v48_v1 = vld [vmem:[#allocation5 + $0x8] sm:$0xff]  ;;  %s298_s11 = smov [#allocation7]  }
  0x27   :  { %v49_v2 = vld [vmem:[#allocation5 + $0x10] sm:$0xff]  ;;  %v205_v3 = vpack.c.bf16 %v48_v1, %v47_v0  ;;  %v50_v4 = vld [vmem:[#allocation5 + $0x18] sm:$0xff]  ;;  %v43_v5 = vld [vmem:[#allocation2] sm:$0xff]  ;;  %s165_s12 = sshll.u32 %s298_s11, 4  ;;  %s166_s12 = int_to_ptr.vmem [resolvable:$true] %s165_s12 }
  0x28   :  { %v45_v6 = vld [vmem:[#allocation2 + $0x10] sm:$0xff]  ;;  %v209_v7 = vpack.c.bf16 %v50_v4, %v49_v2  ;;  %199 = vmatprep.mubr.msk.f32.mxu0 %vm58_vm0, %v43_v5  ;;  %v44_v8 = vld [vmem:[#allocation2 + $0x8] sm:$0xff]  ;;  %v46_v9 = vld [vmem:[#allocation2 + $0x18] sm:$0xff]  ;;  %p271_p3 = scmp.lt.s32.totalorder %s166_s12, %s166_s12 }
  0x29   :  { %202 = vmatprep.mubr.msk.f32.mxu1 %vm58_vm0, %v45_v6  ;;  %206 = vmatprep.subr.bf16.mxu0 %v205_v3  ;;  %v178_v10 = vld [vmem:[%s377_s2] ss:$0 sm:$0xff]  ;;  %s266_s2 = scalar_lea.vmem %s166_s12, 512 }
  0x2a   :  { %213 = vmatprep.subr.bf16.mxu1 %v205_v3  ;;  %208 = vmatpush3.bf16.msra.mxu0 %v205_v3  ;;  %p267_p2 = scmp.ne.s32.totalorder %s166_s12, %s266_s2  ;;  %p272_p4 = scmp.lt.s32.totalorder %s266_s2, %s266_s2 }
  0x2b   :  { %215 = vmatpush3.bf16.msra.mxu1 %v205_v3  ;;  %210 = vmatprep.subr.bf16.mxu0 %v209_v7 }
  0x2c   :  { %214 = vmatprep.subr.bf16.mxu1 %v209_v7  ;;  %p273_p5 = por %p272_p4, %p271_p3 }
  0x2e   :  { %212 = vmatpush3.bf16.msra.mxu0 %v209_v7  ;;  %p274_p6 = pnand %p273_p5, %p267_p2 }
  0x2f   :  { %216 = vmatpush3.bf16.msra.mxu1 %v209_v7 }
  0x31   :  { %200 = vmatmul.mubr.msk.f32.vlgmr.msra.gmra.mrb[0].mxu0 %vm58_vm0, %v44_v8 }
  0x32   :  { %203 = vmatmul.mubr.msk.f32.vlgmr.msra.gmra.mrb[0].mxu1 %vm58_vm0, %v46_v9 }
 0x104   :  { %v201_v11 = vpop.f32.mrb[0].mxu0 }
 0x105   :  { %v204_v12 = vpop.f32.mrb[0].mxu1  ;;  %v143_v13 = vadd.f32 %v201_v11, %v178_v10  ;;  %v137_v15 = vpop.f32.mrb[1].mxu0 }
 0x106   :  { %v153_v14 = vadd.f32 %v204_v12, %v178_v10  ;;  %v147_v16 = vpop.f32.mrb[1].mxu1  ;;  %v138_v17 = vadd.f32 %v178_v10, %v137_v15 }
 0x107   :  { %v148_v18 = vadd.f32 %v178_v10, %v147_v16  ;;  %157 = vst.msk [vmem:[#allocation7 + $0x8] sm:$0xff] %vm58_vm0, %v143_v13 }
 0x108   :  { %159 = vst.msk [vmem:[#allocation7 + $0x18] sm:$0xff] %vm58_vm0, %v153_v14  ;;  %156 = vst.msk [vmem:[#allocation7] sm:$0xff] %vm58_vm0, %v138_v17 }
 0x109   :  { %158 = vst.msk [vmem:[#allocation7 + $0x10] sm:$0xff] %vm58_vm0, %v148_v18 }
 0x10a   :  { %277 = shalt.err (!%p274_p6)
}
 0x10b   :  { %s278_s15 = scalar_lea.hbm %s378_s3, 512 }
 0x10c   :  { %p279_p7 = scmp.ne.s32.totalorder %s378_s3, %s278_s15  ;;  %p282_p8 = scmp.lt.u32.totalorder %s278_s15, %s378_s3 }
 0x10e   :  { %p284_p9 = pnand %p282_p8, %p279_p7 }
 0x110   :  { %287 = shalt.err (!%p284_p9)
}
 0x111   :  { %171 = dma.vmem_to_hbm [thread:$0]  %s166_s12, 512, %s378_s3, [#allocation4], %s295_s22, %s295_s22, %s296_s23  }
 0x112   :  { %292 = dma.done.wait [#allocation4], 512  }
 0x113   :  { %293 = vsyncadd [#allocation4], 4294966784 }
 0x114   :  { %175 = vsyncpa [#allocation3], 1 }
 0x115   :  { %176 = vsyncpa [#allocation6], 1 }
 0x116   :  { %177 = vsyncpa [#allocation4], 1 }

</bundles_post_ra>
